<compile_context>
chip_gen: v7x
topology: tpu7x:2x2x1
jax: 0.10.0
libtpu: 0.0.40
codegen_flags: <defaults>
</compile_context>

<pallas_src>
import functools

import jax
import jax.numpy as jnp
from jax import lax
from jax.experimental import pallas as pl
from jax.experimental.pallas import tpu as pltpu


def _round_up(x, m):
    return ((x + m - 1) // m) * m


# ----------------------------- Pallas kernel ------------------------------- #
def _conv_fused_kernel(x_ref, w_ref, b_ref, o_ref, *, tap_offsets, cout, hs):
    # x_ref : (Cin, L)          one padded, flattened input image (lanes = spatial)
    # w_ref : (KH*KW, Cout, Cin) per-tap weight matrices
    # b_ref : (Cout, 1)         bias column (broadcast over the lane/spatial axis)
    # o_ref : (Cout, HS)        lane-dense output slab (Hout*Wpad padded to 128 lanes)
    acc = jnp.zeros((cout, hs), dtype=jnp.float32)
    for t, s in enumerate(tap_offsets):
        # Static lane offset of this conv tap; the 9 shifted sub-matmuls
        # accumulate the full 3x3 convolution (fused im2col, no HBM patches).
        x_tap = x_ref[:, pl.ds(s, hs)]                       # (Cin, HS)
        acc = acc + jnp.dot(w_ref[t], x_tap,
                            preferred_element_type=jnp.float32)
    acc = acc + b_ref[...]                                   # bias over all lanes
    # norm = None for this instance; activation = ReLU fused here.
    # TODO(synk): if a norm layer (e.g. BatchNorm/GroupNorm) were configured it
    #             would be fused here, before the activation.
    o_ref[...] = jnp.maximum(acc, 0.0).astype(o_ref.dtype)


# ----------------------------- forward wrapper ------------------------------ #
@functools.partial(jax.jit, static_argnums=(3, 4))
def conv2d_forward(x, weight, bias, kernel_size=3, padding=1):
    """Equivalent of Conv2d(...).forward(x) with norm=None, activation=ReLU (stride=1).

    x      : [N, Cin, H, W]   (NCHW, matching PyTorch)
    weight : [Cout, Cin, KH, KW]
    bias   : [Cout]
    returns: [N, Cout, Hout, Wout]
    """
    N, Cin, H, W = x.shape
    Cout = weight.shape[0]
    kh = kw = kernel_size
    pad = padding
    Hp, Wp = H + 2 * pad, W + 2 * pad
    Hout, Wout = Hp - kh + 1, Wp - kw + 1                    # stride 1

    # Lane-dense accumulator width: valid outputs live at p = h*Wp + w
    # (h < Hout, w < Wout); round Hout*Wp up to a whole number of 128-lane vregs.
    HS = _round_up(Hout * Wp, 128)
    # Flat padded-input length: each tap reads x_flat[:, s : s + HS] with
    # s <= (kh-1)*Wp + (kw-1); pad so every read stays in bounds, lane-aligned.
    L = _round_up((kh - 1) * Wp + (kw - 1) + HS, 128)

    xp = jnp.pad(x, ((0, 0), (0, 0), (pad, pad), (pad, pad)))      # [N, Cin, Hp, Wp]
    x_flat = xp.reshape(N, Cin, Hp * Wp)
    x_flat = jnp.pad(x_flat, ((0, 0), (0, 0), (0, L - Hp * Wp)))   # [N, Cin, L]

    # weight [Cout, Cin, KH, KW] -> per-tap [KH*KW, Cout, Cin]
    w_taps = weight.transpose(2, 3, 0, 1).reshape(kh * kw, Cout, Cin)
    b_col = bias.reshape(Cout, 1)

    tap_offsets = tuple(i * Wp + j for i in range(kh) for j in range(kw))
    kernel = functools.partial(_conv_fused_kernel,
                               tap_offsets=tap_offsets, cout=Cout, hs=HS)

    out_flat = pl.pallas_call(
        kernel,
        out_shape=jax.ShapeDtypeStruct((N, Cout, HS), jnp.float32),
        grid_spec=pltpu.PrefetchScalarGridSpec(
            num_scalar_prefetch=0,
            grid=(N,),                                   # one step per image
            in_specs=[
                pl.BlockSpec((None, Cin, L), lambda n: (n, 0, 0)),
                # weights / bias are grid-invariant (constant index_map), so the
                # pipeline does not re-DMA them between steps.
                pl.BlockSpec((kh * kw, Cout, Cin), lambda n: (0, 0, 0)),
                pl.BlockSpec((Cout, 1), lambda n: (0, 0)),
            ],
            out_specs=pl.BlockSpec((None, Cout, HS), lambda n: (n, 0, 0)),
        ),
        compiler_params=pltpu.CompilerParams(
            dimension_semantics=("parallel",)),
    )(x_flat, w_taps, b_col)

    # Crop the width-padding columns; layout is already [N, Cout, spatial],
    # so no NCHW transpose is needed.
    out = out_flat[:, :, :Hout * Wp].reshape(N, Cout, Hout, Wp)[:, :, :, :Wout]
    return out


# ----------------------------- main ----------------------------------------- #
if __name__ == "__main__":
    key = jax.random.PRNGKey(0)
    k_x, k_w, k_b = jax.random.split(key, 3)

    N, Cin, H, W = 2, 4, 16, 16
    Cout, KH, KW = 8, 3, 3

    x = jax.random.normal(k_x, (N, Cin, H, W), dtype=jnp.float32)

    # Deterministic parameter init (kaiming-uniform-like bound, as in nn.Conv2d)
    fan_in = Cin * KH * KW
    bound = 1.0 / jnp.sqrt(fan_in)
    weight = jax.random.uniform(k_w, (Cout, Cin, KH, KW),
                                minval=-bound, maxval=bound, dtype=jnp.float32)
    bias = jax.random.uniform(k_b, (Cout,),
                              minval=-bound, maxval=bound, dtype=jnp.float32)

    out = conv2d_forward(x, weight, bias)
    jax.block_until_ready(out)

    # Reference check against XLA's native convolution + bias + ReLU.
    ref = lax.conv_general_dilated(
        x, weight, window_strides=(1, 1), padding=((1, 1), (1, 1)),
        dimension_numbers=("NCHW", "OIHW", "NCHW"))
    ref = jnp.maximum(ref + bias[None, :, None, None], 0.0)

    assert out.shape == (N, Cout, H, W)
    assert jnp.allclose(out, ref, atol=1e-4, rtol=1e-4)

    print("KERNEL_OK")
</pallas_src>

<mosaic_0001>
module attributes {stable_mosaic.version = 11 : i64} {
  func.func @_conv_fused_kernel(%arg0: i32, %arg1: memref<1x4x512xf32, #tpu.memory_space<vmem>>, %arg2: memref<9x8x4xf32, #tpu.memory_space<vmem>>, %arg3: memref<8x1xf32, #tpu.memory_space<vmem>>, %arg4: memref<1x8x384xf32, #tpu.memory_space<vmem>>) attributes {dimension_semantics = [#tpu.dimension_semantics<parallel>], iteration_bounds = array<i64: 2>, scalar_prefetch = 0 : i64, scratch_operands = 0 : i64, tpu.core_type = #tpu.core_type<tc>, window_params = [{transform_indices = @transform_0, window_bounds = array<i64: 1, 4, 512>}, {pipeline_mode = #tpu.pipeline_mode<synchronous>, transform_indices = @transform_1, window_bounds = array<i64: 9, 8, 4>}, {pipeline_mode = #tpu.pipeline_mode<synchronous>, transform_indices = @transform_2, window_bounds = array<i64: 8, 1>}, {transform_indices = @transform_3, window_bounds = array<i64: 1, 8, 384>}]} {
    %cst = arith.constant 0.000000e+00 : f32
    %0 = vector.broadcast %cst : f32 to vector<8x384xf32>
    %c0 = arith.constant 0 : index
    %c0_0 = arith.constant 0 : index
    %c0_1 = arith.constant 0 : index
    %1 = vector.load %arg1[%c0, %c0_0, %c0_1] : memref<1x4x512xf32, #tpu.memory_space<vmem>>, vector<1x4x384xf32>
    %2 = vector.shape_cast %1 : vector<1x4x384xf32> to vector<4x384xf32>
    %c0_2 = arith.constant 0 : index
    %c0_3 = arith.constant 0 : index
    %c0_4 = arith.constant 0 : index
    %3 = vector.load %arg2[%c0_2, %c0_3, %c0_4] : memref<9x8x4xf32, #tpu.memory_space<vmem>>, vector<1x8x4xf32>
    %4 = vector.shape_cast %3 : vector<1x8x4xf32> to vector<8x4xf32>
    %cst_5 = arith.constant dense<0.000000e+00> : vector<8x384xf32>
    %5 = tpu.matmul %4, %2, %cst_5 {dimension_numbers = #tpu.dot_dimension_numbers<[1], [0], [0], [1], [0, 0, 1, 1], [], []>} : vector<8x4xf32>, vector<4x384xf32>, vector<8x384xf32> -> vector<8x384xf32>
    %6 = arith.addf %0, %5 : vector<8x384xf32>
    %c0_6 = arith.constant 0 : index
    %c0_7 = arith.constant 0 : index
    %c1 = arith.constant 1 : index
    %7 = vector.load %arg1[%c0_6, %c0_7, %c1] : memref<1x4x512xf32, #tpu.memory_space<vmem>>, vector<1x4x384xf32>
    %8 = vector.shape_cast %7 : vector<1x4x384xf32> to vector<4x384xf32>
    %c1_8 = arith.constant 1 : index
    %c0_9 = arith.constant 0 : index
    %c0_10 = arith.constant 0 : index
    %9 = vector.load %arg2[%c1_8, %c0_9, %c0_10] : memref<9x8x4xf32, #tpu.memory_space<vmem>>, vector<1x8x4xf32>
    %10 = vector.shape_cast %9 : vector<1x8x4xf32> to vector<8x4xf32>
    %cst_11 = arith.constant dense<0.000000e+00> : vector<8x384xf32>
    %11 = tpu.matmul %10, %8, %cst_11 {dimension_numbers = #tpu.dot_dimension_numbers<[1], [0], [0], [1], [0, 0, 1, 1], [], []>} : vector<8x4xf32>, vector<4x384xf32>, vector<8x384xf32> -> vector<8x384xf32>
    %12 = arith.addf %6, %11 : vector<8x384xf32>
    %c0_12 = arith.constant 0 : index
    %c0_13 = arith.constant 0 : index
    %c2 = arith.constant 2 : index
    %13 = vector.load %arg1[%c0_12, %c0_13, %c2] : memref<1x4x512xf32, #tpu.memory_space<vmem>>, vector<1x4x384xf32>
    %14 = vector.shape_cast %13 : vector<1x4x384xf32> to vector<4x384xf32>
    %c2_14 = arith.constant 2 : index
    %c0_15 = arith.constant 0 : index
    %c0_16 = arith.constant 0 : index
    %15 = vector.load %arg2[%c2_14, %c0_15, %c0_16] : memref<9x8x4xf32, #tpu.memory_space<vmem>>, vector<1x8x4xf32>
    %16 = vector.shape_cast %15 : vector<1x8x4xf32> to vector<8x4xf32>
    %cst_17 = arith.constant dense<0.000000e+00> : vector<8x384xf32>
    %17 = tpu.matmul %16, %14, %cst_17 {dimension_numbers = #tpu.dot_dimension_numbers<[1], [0], [0], [1], [0, 0, 1, 1], [], []>} : vector<8x4xf32>, vector<4x384xf32>, vector<8x384xf32> -> vector<8x384xf32>
    %18 = arith.addf %12, %17 : vector<8x384xf32>
    %c0_18 = arith.constant 0 : index
    %c0_19 = arith.constant 0 : index
    %c18 = arith.constant 18 : index
    %19 = vector.load %arg1[%c0_18, %c0_19, %c18] : memref<1x4x512xf32, #tpu.memory_space<vmem>>, vector<1x4x384xf32>
    %20 = vector.shape_cast %19 : vector<1x4x384xf32> to vector<4x384xf32>
    %c3 = arith.constant 3 : index
    %c0_20 = arith.constant 0 : index
    %c0_21 = arith.constant 0 : index
    %21 = vector.load %arg2[%c3, %c0_20, %c0_21] : memref<9x8x4xf32, #tpu.memory_space<vmem>>, vector<1x8x4xf32>
    %22 = vector.shape_cast %21 : vector<1x8x4xf32> to vector<8x4xf32>
    %cst_22 = arith.constant dense<0.000000e+00> : vector<8x384xf32>
    %23 = tpu.matmul %22, %20, %cst_22 {dimension_numbers = #tpu.dot_dimension_numbers<[1], [0], [0], [1], [0, 0, 1, 1], [], []>} : vector<8x4xf32>, vector<4x384xf32>, vector<8x384xf32> -> vector<8x384xf32>
    %24 = arith.addf %18, %23 : vector<8x384xf32>
    %c0_23 = arith.constant 0 : index
    %c0_24 = arith.constant 0 : index
    %c19 = arith.constant 19 : index
    %25 = vector.load %arg1[%c0_23, %c0_24, %c19] : memref<1x4x512xf32, #tpu.memory_space<vmem>>, vector<1x4x384xf32>
    %26 = vector.shape_cast %25 : vector<1x4x384xf32> to vector<4x384xf32>
    %c4 = arith.constant 4 : index
    %c0_25 = arith.constant 0 : index
    %c0_26 = arith.constant 0 : index
    %27 = vector.load %arg2[%c4, %c0_25, %c0_26] : memref<9x8x4xf32, #tpu.memory_space<vmem>>, vector<1x8x4xf32>
    %28 = vector.shape_cast %27 : vector<1x8x4xf32> to vector<8x4xf32>
    %cst_27 = arith.constant dense<0.000000e+00> : vector<8x384xf32>
    %29 = tpu.matmul %28, %26, %cst_27 {dimension_numbers = #tpu.dot_dimension_numbers<[1], [0], [0], [1], [0, 0, 1, 1], [], []>} : vector<8x4xf32>, vector<4x384xf32>, vector<8x384xf32> -> vector<8x384xf32>
    %30 = arith.addf %24, %29 : vector<8x384xf32>
    %c0_28 = arith.constant 0 : index
    %c0_29 = arith.constant 0 : index
    %c20 = arith.constant 20 : index
    %31 = vector.load %arg1[%c0_28, %c0_29, %c20] : memref<1x4x512xf32, #tpu.memory_space<vmem>>, vector<1x4x384xf32>
    %32 = vector.shape_cast %31 : vector<1x4x384xf32> to vector<4x384xf32>
    %c5 = arith.constant 5 : index
    %c0_30 = arith.constant 0 : index
    %c0_31 = arith.constant 0 : index
    %33 = vector.load %arg2[%c5, %c0_30, %c0_31] : memref<9x8x4xf32, #tpu.memory_space<vmem>>, vector<1x8x4xf32>
    %34 = vector.shape_cast %33 : vector<1x8x4xf32> to vector<8x4xf32>
    %cst_32 = arith.constant dense<0.000000e+00> : vector<8x384xf32>
    %35 = tpu.matmul %34, %32, %cst_32 {dimension_numbers = #tpu.dot_dimension_numbers<[1], [0], [0], [1], [0, 0, 1, 1], [], []>} : vector<8x4xf32>, vector<4x384xf32>, vector<8x384xf32> -> vector<8x384xf32>
    %36 = arith.addf %30, %35 : vector<8x384xf32>
    %c0_33 = arith.constant 0 : index
    %c0_34 = arith.constant 0 : index
    %c36 = arith.constant 36 : index
    %37 = vector.load %arg1[%c0_33, %c0_34, %c36] : memref<1x4x512xf32, #tpu.memory_space<vmem>>, vector<1x4x384xf32>
    %38 = vector.shape_cast %37 : vector<1x4x384xf32> to vector<4x384xf32>
    %c6 = arith.constant 6 : index
    %c0_35 = arith.constant 0 : index
    %c0_36 = arith.constant 0 : index
    %39 = vector.load %arg2[%c6, %c0_35, %c0_36] : memref<9x8x4xf32, #tpu.memory_space<vmem>>, vector<1x8x4xf32>
    %40 = vector.shape_cast %39 : vector<1x8x4xf32> to vector<8x4xf32>
    %cst_37 = arith.constant dense<0.000000e+00> : vector<8x384xf32>
    %41 = tpu.matmul %40, %38, %cst_37 {dimension_numbers = #tpu.dot_dimension_numbers<[1], [0], [0], [1], [0, 0, 1, 1], [], []>} : vector<8x4xf32>, vector<4x384xf32>, vector<8x384xf32> -> vector<8x384xf32>
    %42 = arith.addf %36, %41 : vector<8x384xf32>
    %c0_38 = arith.constant 0 : index
    %c0_39 = arith.constant 0 : index
    %c37 = arith.constant 37 : index
    %43 = vector.load %arg1[%c0_38, %c0_39, %c37] : memref<1x4x512xf32, #tpu.memory_space<vmem>>, vector<1x4x384xf32>
    %44 = vector.shape_cast %43 : vector<1x4x384xf32> to vector<4x384xf32>
    %c7 = arith.constant 7 : index
    %c0_40 = arith.constant 0 : index
    %c0_41 = arith.constant 0 : index
    %45 = vector.load %arg2[%c7, %c0_40, %c0_41] : memref<9x8x4xf32, #tpu.memory_space<vmem>>, vector<1x8x4xf32>
    %46 = vector.shape_cast %45 : vector<1x8x4xf32> to vector<8x4xf32>
    %cst_42 = arith.constant dense<0.000000e+00> : vector<8x384xf32>
    %47 = tpu.matmul %46, %44, %cst_42 {dimension_numbers = #tpu.dot_dimension_numbers<[1], [0], [0], [1], [0, 0, 1, 1], [], []>} : vector<8x4xf32>, vector<4x384xf32>, vector<8x384xf32> -> vector<8x384xf32>
    %48 = arith.addf %42, %47 : vector<8x384xf32>
    %c0_43 = arith.constant 0 : index
    %c0_44 = arith.constant 0 : index
    %c38 = arith.constant 38 : index
    %49 = vector.load %arg1[%c0_43, %c0_44, %c38] : memref<1x4x512xf32, #tpu.memory_space<vmem>>, vector<1x4x384xf32>
    %50 = vector.shape_cast %49 : vector<1x4x384xf32> to vector<4x384xf32>
    %c8 = arith.constant 8 : index
    %c0_45 = arith.constant 0 : index
    %c0_46 = arith.constant 0 : index
    %51 = vector.load %arg2[%c8, %c0_45, %c0_46] : memref<9x8x4xf32, #tpu.memory_space<vmem>>, vector<1x8x4xf32>
    %52 = vector.shape_cast %51 : vector<1x8x4xf32> to vector<8x4xf32>
    %cst_47 = arith.constant dense<0.000000e+00> : vector<8x384xf32>
    %53 = tpu.matmul %52, %50, %cst_47 {dimension_numbers = #tpu.dot_dimension_numbers<[1], [0], [0], [1], [0, 0, 1, 1], [], []>} : vector<8x4xf32>, vector<4x384xf32>, vector<8x384xf32> -> vector<8x384xf32>
    %54 = arith.addf %48, %53 : vector<8x384xf32>
    %c0_48 = arith.constant 0 : index
    %c0_49 = arith.constant 0 : index
    %55 = vector.load %arg3[%c0_48, %c0_49] : memref<8x1xf32, #tpu.memory_space<vmem>>, vector<8x1xf32>
    %56 = vector.broadcast %55 : vector<8x1xf32> to vector<8x384xf32>
    %57 = arith.addf %54, %56 : vector<8x384xf32>
    %cst_50 = arith.constant 0.000000e+00 : f32
    %58 = vector.broadcast %cst_50 : f32 to vector<8x384xf32>
    %59 = arith.maximumf %57, %58 : vector<8x384xf32>
    %c0_51 = arith.constant 0 : index
    %c0_52 = arith.constant 0 : index
    %c0_53 = arith.constant 0 : index
    %60 = vector.load %arg4[%c0_51, %c0_52, %c0_53] : memref<1x8x384xf32, #tpu.memory_space<vmem>>, vector<1x8x384xf32>
    %61 = vector.shape_cast %60 : vector<1x8x384xf32> to vector<8x384xf32>
    %62 = vector.shape_cast %59 : vector<8x384xf32> to vector<1x8x384xf32>
    tpu.vector_store %arg4[%c0_51, %c0_52, %c0_53], %62 {strides = array<i32>} : memref<1x8x384xf32, #tpu.memory_space<vmem>>, vector<1x8x384xf32>,
    return
  }
  func.func @transform_0(%arg0: i32) -> (i32, i32, i32) {
    %c0_i32 = arith.constant 0 : i32
    %c0_i32_0 = arith.constant 0 : i32
    %c0_i32_1 = arith.constant 0 : i32
    return %arg0, %c0_i32, %c0_i32_0 : i32, i32, i32
  }
  func.func @transform_1(%arg0: i32) -> (i32, i32, i32) {
    %c0_i32 = arith.constant 0 : i32
    %c0_i32_0 = arith.constant 0 : i32
    %c0_i32_1 = arith.constant 0 : i32
    %c0_i32_2 = arith.constant 0 : i32
    return %c0_i32, %c0_i32_0, %c0_i32_1 : i32, i32, i32
  }
  func.func @transform_2(%arg0: i32) -> (i32, i32) {
    %c0_i32 = arith.constant 0 : i32
    %c0_i32_0 = arith.constant 0 : i32
    %c0_i32_1 = arith.constant 0 : i32
    return %c0_i32, %c0_i32_0 : i32, i32
  }
  func.func @transform_3(%arg0: i32) -> (i32, i32, i32) {
    %c0_i32 = arith.constant 0 : i32
    %c0_i32_0 = arith.constant 0 : i32
    %c0_i32_1 = arith.constant 0 : i32
    return %arg0, %c0_i32, %c0_i32_0 : i32, i32, i32
  }
}

</mosaic_0001>

<bundles_post_ra>
// kernel: conv2d_forward.1
= control target key start
LH: loop header
LB: loop body
LE: loop exit
PB: predicated region body
PF: predicated region fallthrough
CT: control target
= control target key end

     0   :  { %s1985_s12 = smov 0   ;;  %s2167_s0 = inlined_call_operand.vmem [shape: f32[2,4,512], index: 0, kind: input, shape index: {}]   ;;  %s2168_s1 = inlined_call_operand.vmem [shape: f32[9,8,4], index: 1, kind: input, shape index: {}]   ;;  %s2169_s2 = inlined_call_operand.vmem [shape: f32[8,1], index: 2, kind: input, shape index: {}]   ;;  %s2170_s3 = inlined_call_operand.vmem [shape: f32[2,8,384], index: 3, kind: output, shape index: {}]  }
   0x1 LB: > { %s1780_s13 = sadd.s32 4294967295, %s1952_s12   ;;  %p1784_p0 = scmp.ge.s32.totalorder %s1952_s12, 1  ;;  %s1952_s12 = sphi %s1985_s12, %s13_s12  }
   0x2   : > { %p137_p1 = scmp.lt.s32.totalorder %s1952_s12, 3 }
   0x4   : > { %p138_p2 = pnand %p1784_p0, %p137_p1 }
   0x5   : > { %p161_p3 = scmp.lt.s32.totalorder (!%p138_p2), %s1780_s13, 1  ;;  %v1954_v0 = vmov (!%p138_p2), 0.0   ;;  %s1955_s18 = smov (!%p138_p2), 127   ;;  %vm1957_vm0 = vmmov (!%p138_p2), 0   ;;  %v1964_v5 = vmov (!%p138_p2), 0   ;;  %v1710_v6 = vld [vmem:[%s2169_s2] sm:$0xff] (!%p138_p2) }
   0x6   : > { %141 = sbr.rel (%p138_p2) target bundleno = 423 (0x1a7), region = 32  ;;  %269 = vmatprep.mubr.f32.mxu0 (!%p138_p2), %v1954_v0  ;;  %1862 = vmatprep.subr.mxu1 (!%p138_p2), %v1954_v0  ;;  %s1956_s19 = smov (!%p138_p2), 126   ;;  %vm190_vm1 = vcmask (!%p138_p2), 1039360   ;;  %vm198_vm2 = vcmask (!%p138_p2), 1043456   ;;  %v1788_v12 = vld [vmem:[%s2168_s1 + $0x8] sm:$0xff] (!%p138_p2)  ;;  %vm194_vm3 = vcmask (!%p138_p2), 31744  }
   0x7   : > { %1864 = vmatprep.mubr.msk.f32.mxu1 (!%p138_p2), %vm1957_vm0, %v1954_v0  ;;  %s1958_s20 = smov (!%p138_p2), 110   ;;  %s1959_s21 = smov (!%p138_p2), 109   ;;  %1943 = vset.pattern.permute.xlu0 (!%p138_p2), %v1964_v5  ;;  %vm515_vm4 = vcmask (!%p138_p2), 1031168   ;;  %vm688_vm5 = vcmask (!%p138_p2), 900096   ;;  %v173_v19 = vld [vmem:[%s2168_s1] sm:$0xff] (!%p138_p2)  ;;  %vm861_vm6 = vcmask (!%p138_p2), 891904  }
   0x8   : > { %s1960_s22 = smov (!%p138_p2), 108   ;;  %s1961_s23 = smov (!%p138_p2), 92   ;;  %v1799_v28 = vld [vmem:[%s2168_s1 + $0x10] sm:$0xff] (!%p138_p2)  ;;  %vm1034_vm7 = vcmask (!%p138_p2), 883712   ;;  %v1805_v36 = vld [vmem:[%s2168_s1 + $0x18] sm:$0xff] (!%p138_p2)  ;;  %v1811_v45 = vld [vmem:[%s2168_s1 + $0x20] sm:$0xff] (!%p138_p2) }
   0x9   : > { %s1962_s24 = smov (!%p138_p2), 91   ;;  %s1963_s25 = smov (!%p138_p2), 90   ;;  %vm1207_vm8 = vcmask (!%p138_p2), 752640   ;;  %v1817_v52 = vld [vmem:[%s2168_s1 + $0x28] sm:$0xff] (!%p138_p2)  ;;  %vm1380_vm9 = vcmask (!%p138_p2), 744448   ;;  %v1823_v58 = vld [vmem:[%s2168_s1 + $0x30] sm:$0xff] (!%p138_p2) }
   0xa   : > { %v1829_v63 = vld [vmem:[%s2168_s1 + $0x38] sm:$0xff] (!%p138_p2)  ;;  %vm1553_vm10 = vcmask (!%p138_p2), 736256  }
   0xd   : > { %s2172_s13 = smov (!%p161_p3, %s1780_s13), 1 }
   0xe   : > { %s1843_s14 = sshll.u32 %s2172_s13, 4 }
   0xf   : > { %s2001_s17 = scalar_lea.vmem %s2167_s0, %s1843_s14 }
  0x10   : > { %v2004_v1 = vld [vmem:[%s2001_s17] sm:$0xff]  ;;  %v175_v3 = vld [vmem:[%s2001_s17 + $0x8] sm:$0xff] }
  0x11   : > { %182 = vrot.lane.b32.xlu1 %v2004_v1, %s1955_s18  ;;  %v2009_v2 = vcombine.high %v2004_v1, %v2004_v1  ;;  %v181_v4 = vcombine.high %v175_v3, %v175_v3  ;;  %v172_v25 = vld [vmem:[%s2001_s17 + $0x8] sm:$0xf] }
  0x13   : > { %184 = vrot.lane.b32.xlu0 %v2009_v2, %s1955_s18 }
  0x15   : > { %507 = vrot.lane.b32.xlu1 %v2004_v1, %s1956_s19 }
  0x17   : > { %186 = vrot.lane.b32.xlu0 %v175_v3, %s1955_s18 }
  0x19   : > { %509 = vrot.lane.b32.xlu1 %v2009_v2, %s1956_s19 }
  0x1b   : > { %511 = vrot.lane.b32.xlu0 %v175_v3, %s1956_s19 }
  0x1d   : > { %684 = vrot.lane.b32.xlu1 %v175_v3, %s1958_s20 }
  0x1f   : > { %682 = vrot.lane.b32.xlu0 %v2009_v2, %s1958_s20 }
  0x21   : > { %188 = vrot.lane.b32.xlu1 %v181_v4, %s1955_s18 }
  0x23   : > { %680 = vrot.lane.b32.xlu0 %v2004_v1, %s1958_s20 }
  0x25   : > { %857 = vrot.lane.b32.xlu1 %v175_v3, %s1959_s21 }
  0x27   : > { %855 = vrot.lane.b32.xlu0 %v2009_v2, %s1959_s21 }
  0x29   : > { %513 = vrot.lane.b32.xlu1 %v181_v4, %s1956_s19 }
  0x2b   : > { %853 = vrot.lane.b32.xlu0 %v2004_v1, %s1959_s21 }
  0x2d   : > { %1030 = vrot.lane.b32.xlu1 %v175_v3, %s1960_s22 }
  0x2f   : > { %1028 = vrot.lane.b32.xlu0 %v2009_v2, %s1960_s22 }
  0x31   : > { %686 = vrot.lane.b32.xlu1 %v181_v4, %s1958_s20 }
  0x33   : > { %1026 = vrot.lane.b32.xlu0 %v2004_v1, %s1960_s22 }
  0x35   : > { %1201 = vrot.lane.b32.xlu1 %v2009_v2, %s1961_s23 }
  0x37   : > { %859 = vrot.lane.b32.xlu0 %v181_v4, %s1959_s21  ;;  %s1923_s21 = smul.u32 24, %s2172_s13 }
  0x39   : > { %1199 = vrot.lane.b32.xlu1 %v2004_v1, %s1961_s23 }
  0x3b   : > { %1203 = vrot.lane.b32.xlu0 %v175_v3, %s1961_s23 }
  0x3d   : > { %1205 = vrot.lane.b32.xlu1 %v181_v4, %s1961_s23 }
  0x3f   : > { %1032 = vrot.lane.b32.xlu0 %v181_v4, %s1960_s22 }
  0x41   : > { %1376 = vrot.lane.b32.xlu1 %v175_v3, %s1962_s24 }
  0x43   : > { %1374 = vrot.lane.b32.xlu0 %v2009_v2, %s1962_s24 }
  0x45   : > { %1378 = vrot.lane.b32.xlu1 %v181_v4, %s1962_s24 }
  0x47   : > { %1372 = vrot.lane.b32.xlu0 %v2004_v1, %s1962_s24  ;;  %s170_s24 = scalar_lea.vmem %s2170_s3, %s1923_s21 }
  0x49   : > { %1549 = vrot.lane.b32.xlu1 %v175_v3, %s1963_s25 }
  0x4b   : > { %1547 = vrot.lane.b32.xlu0 %v2009_v2, %s1963_s25 }
  0x4d   : > { %1545 = vrot.lane.b32.xlu1 %v2004_v1, %s1963_s25 }
  0x4f   : > { %1551 = vrot.lane.b32.xlu0 %v181_v4, %s1963_s25 }
  0x53   : > { %1713 = vperm.xlu0 %1943, %v1710_v6  }
  0x83   : > { %v183_v7 = vpop.permute.xlu1 %182 }
  0x85   : > { %v185_v8 = vpop.permute.xlu0 %184 }
  0x86   : > { %v191_v14 = vsel %vm190_vm1, %v183_v7, %v185_v8  ;;  %v1835_v7 = vld [vmem:[%s2168_s1 + $0x40] sm:$0xff] }
  0x87   : > { %v508_v9 = vpop.permute.xlu1 %507 }
  0x89   : > { %v187_v10 = vpop.permute.xlu0 %186 }
  0x8a   : > { %v192_v11 = vsel %vm190_vm1, %v185_v8, %v187_v10 }
  0x8b   : > { %v510_v13 = vpop.permute.xlu1 %509  ;;  %1789 = vmatprep.subr.msk.mxu0 %vm198_vm2, %v192_v11 }
  0x8c   : > { %1790 = vmatpush1.msk.msra.mxu0 %vm198_vm2, %v191_v14  ;;  %v516_v20 = vsel %vm515_vm4, %v508_v9, %v510_v13 }
  0x8d   : > { %1791 = vmatmul.mubr.msk.f32.vlgmr.msra.gmra.mrb[0].mxu0 %vm194_vm3, %v1788_v12  ;;  %v512_v15 = vpop.permute.xlu0 %511  ;;  %1794 = vmatprep.subr.msk.mxu0 %vm198_vm2, %v2009_v2 }
  0x8e   : > { %v517_v16 = vsel %vm515_vm4, %v510_v13, %v512_v15  ;;  %1795 = vmatpush1.msk.msra.mxu0 %vm198_vm2, %v2004_v1  ;;  %422 = vmatprep.mubr.f32.mxu0 %v1954_v0 }
  0x8f   : > { %v685_v17 = vpop.permute.xlu1 %684  ;;  %1800 = vmatprep.subr.msk.mxu0 %vm198_vm2, %v517_v16 }
  0x91   : > { %v683_v18 = vpop.permute.xlu0 %682 }
  0x92   : > { %v690_v22 = vsel %vm688_vm5, %v683_v18, %v685_v17 }
  0x93   : > { %v189_v21 = vpop.permute.xlu1 %188 }
  0x94   : > { %v193_v23 = vsel %vm190_vm1, %v187_v10, %v189_v21 }
  0x95   : > { %1863 = vmatpush3.msk.msra.mxu1 %vm198_vm2, %v193_v23  ;;  %v681_v24 = vpop.permute.xlu0 %680  ;;  %1796 = vmatmul.mubr.msk.f32.vlgmr.msra.gmra.mrb[0].mxu0 %vm194_vm3, %v173_v19 }
  0x96   : > { %1801 = vmatpush1.msk.msra.mxu0 %vm198_vm2, %v516_v20  ;;  %1865 = vmatmul.mubr.msk.f32.vlgmr.msra.gmra.mrb[0].mxu1 %vm194_vm3, %v1788_v12  ;;  %v689_v32 = vsel %vm688_vm5, %v681_v24, %v683_v18 }
  0x97   : > { %1806 = vmatprep.subr.msk.mxu0 %vm198_vm2, %v690_v22  ;;  %v858_v26 = vpop.permute.xlu1 %857  ;;  %1867 = vmatprep.subr.mxu1 %v1954_v0 }
  0x98   : > { %1868 = vmatpush3.msk.msra.mxu1 %vm198_vm2, %v172_v25  ;;  %1869 = vmatprep.mubr.msk.f32.mxu1 %vm1957_vm0, %v1954_v0 }
  0x99   : > { %v856_v27 = vpop.permute.xlu0 %855  ;;  %592 = vmatprep.mubr.f32.mxu0 %v1954_v0  ;;  %1872 = vmatprep.subr.mxu1 %v1954_v0 }
  0x9a   : > { %1870 = vmatmul.mubr.msk.f32.vlgmr.msra.gmra.mrb[2].mxu1 %vm194_vm3, %v173_v19  ;;  %v863_v30 = vsel %vm861_vm6, %v856_v27, %v858_v26 }
  0x9b   : > { %v514_v29 = vpop.permute.xlu1 %513  ;;  %1874 = vmatprep.mubr.msk.f32.mxu1 %vm1957_vm0, %v1954_v0 }
  0x9c   : > { %v518_v31 = vsel %vm515_vm4, %v512_v15, %v514_v29 }
  0x9d   : > { %v854_v33 = vpop.permute.xlu0 %853  ;;  %1802 = vmatmul.mubr.msk.f32.vlgmr.msra.gmra.mrb[0].mxu0 %vm194_vm3, %v1799_v28  ;;  %1873 = vmatpush3.msk.msra.mxu1 %vm198_vm2, %v518_v31 }
  0x9e   : > { %1807 = vmatpush1.msk.msra.mxu0 %vm198_vm2, %v689_v32  ;;  %765 = vmatprep.mubr.f32.mxu0 %v1954_v0  ;;  %v862_v40 = vsel %vm861_vm6, %v854_v33, %v856_v27 }
  0x9f   : > { %1812 = vmatprep.subr.msk.mxu0 %vm198_vm2, %v863_v30  ;;  %v1031_v34 = vpop.permute.xlu1 %1030  ;;  %1877 = vmatprep.subr.mxu1 %v1954_v0 }
  0xa0   : > { %1875 = vmatmul.mubr.msk.f32.vlgmr.msra.gmra.mrb[4].mxu1 %vm194_vm3, %v1799_v28 }
  0xa1   : > { %v1029_v35 = vpop.permute.xlu0 %1028  ;;  %1879 = vmatprep.mubr.msk.f32.mxu1 %vm1957_vm0, %v1954_v0 }
  0xa2   : > { %v1036_v38 = vsel %vm1034_vm7, %v1029_v35, %v1031_v34 }
  0xa3   : > { %v687_v37 = vpop.permute.xlu1 %686 }
  0xa4   : > { %v691_v39 = vsel %vm688_vm5, %v685_v17, %v687_v37 }
  0xa5   : > { %v1027_v41 = vpop.permute.xlu0 %1026  ;;  %1808 = vmatmul.mubr.msk.f32.vlgmr.msra.gmra.mrb[0].mxu0 %vm194_vm3, %v1805_v36  ;;  %1878 = vmatpush3.msk.msra.mxu1 %vm198_vm2, %v691_v39 }
  0xa6   : > { %1813 = vmatpush1.msk.msra.mxu0 %vm198_vm2, %v862_v40  ;;  %1882 = vmatprep.subr.mxu1 %v1954_v0  ;;  %v1035_v47 = vsel %vm1034_vm7, %v1027_v41, %v1029_v35 }
  0xa7   : > { %1818 = vmatprep.subr.msk.mxu0 %vm198_vm2, %v1036_v38  ;;  %v1202_v42 = vpop.permute.xlu1 %1201  ;;  %1880 = vmatmul.mubr.msk.f32.vlgmr.msra.gmra.mrb[6].mxu1 %vm194_vm3, %v1805_v36 }
  0xa8   : > { %938 = vmatprep.mubr.f32.mxu0 %v1954_v0  ;;  %1884 = vmatprep.mubr.msk.f32.mxu1 %vm1957_vm0, %v1954_v0 }
  0xa9   : > { %v860_v43 = vpop.permute.xlu0 %859 }
  0xaa   : > { %v864_v44 = vsel %vm861_vm6, %v858_v26, %v860_v43 }
  0xab   : > { %1883 = vmatpush3.msk.msra.mxu1 %vm198_vm2, %v864_v44  ;;  %v1200_v46 = vpop.permute.xlu1 %1199 }
  0xac   : > { %1885 = vmatmul.mubr.msk.f32.vlgmr.msra.gmra.mrb[8].mxu1 %vm194_vm3, %v1811_v45  ;;  %1887 = vmatprep.subr.mxu1 %v1954_v0  ;;  %v1208_v55 = vsel %vm1207_vm8, %v1200_v46, %v1202_v42 }
  0xad   : > { %v1204_v48 = vpop.permute.xlu0 %1203  ;;  %1814 = vmatmul.mubr.msk.f32.vlgmr.msra.gmra.mrb[0].mxu0 %vm194_vm3, %v1811_v45  ;;  %1889 = vmatprep.mubr.msk.f32.mxu1 %vm1957_vm0, %v1954_v0 }
  0xae   : > { %v1209_v49 = vsel %vm1207_vm8, %v1202_v42, %v1204_v48  ;;  %1819 = vmatpush1.msk.msra.mxu0 %vm198_vm2, %v1035_v47  ;;  %1111 = vmatprep.mubr.f32.mxu0 %v1954_v0 }
  0xaf   : > { %1824 = vmatprep.subr.msk.mxu0 %vm198_vm2, %v1209_v49  ;;  %v1206_v50 = vpop.permute.xlu1 %1205 }
  0xb0   : > { %v1210_v53 = vsel %vm1207_vm8, %v1204_v48, %v1206_v50 }
  0xb1   : > { %v1033_v51 = vpop.permute.xlu0 %1032 }
  0xb2   : > { %v1037_v54 = vsel %vm1034_vm7, %v1031_v34, %v1033_v51 }
  0xb3   : > { %1888 = vmatpush3.msk.msra.mxu1 %vm198_vm2, %v1037_v54  ;;  %v1377_v56 = vpop.permute.xlu1 %1376 }
  0xb4   : > { %1890 = vmatmul.mubr.msk.f32.vlgmr.msra.gmra.mrb[10].mxu1 %vm194_vm3, %v1817_v52  ;;  %1892 = vmatprep.subr.mxu1 %v1954_v0 }
  0xb5   : > { %v1375_v57 = vpop.permute.xlu0 %1374  ;;  %1820 = vmatmul.mubr.msk.f32.vlgmr.msra.gmra.mrb[0].mxu0 %vm194_vm3, %v1817_v52  ;;  %1893 = vmatpush3.msk.msra.mxu1 %vm198_vm2, %v1210_v53 }
  0xb6   : > { %v1382_v59 = vsel %vm1380_vm9, %v1375_v57, %v1377_v56  ;;  %1825 = vmatpush1.msk.msra.mxu0 %vm198_vm2, %v1208_v55  ;;  %1894 = vmatprep.mubr.msk.f32.mxu1 %vm1957_vm0, %v1954_v0 }
  0xb7   : > { %v1379_v60 = vpop.permute.xlu1 %1378  ;;  %1897 = vmatprep.subr.mxu1 %v1954_v0  ;;  %1830 = vmatprep.subr.msk.mxu0 %vm198_vm2, %v1382_v59 }
  0xb8   : > { %v1383_v61 = vsel %vm1380_vm9, %v1377_v56, %v1379_v60  ;;  %1895 = vmatmul.mubr.msk.f32.vlgmr.msra.gmra.mrb[12].mxu1 %vm194_vm3, %v1823_v58  ;;  %1284 = vmatprep.mubr.f32.mxu0 %v1954_v0 }
  0xb9   : > { %v1373_v62 = vpop.permute.xlu0 %1372  ;;  %1898 = vmatpush3.msk.msra.mxu1 %vm198_vm2, %v1383_v61  ;;  %1899 = vmatprep.mubr.msk.f32.mxu1 %vm1957_vm0, %v1954_v0 }
  0xba   : > { %1902 = vmatprep.subr.mxu1 %v1954_v0  ;;  %v1381_v1 = vsel %vm1380_vm9, %v1373_v62, %v1375_v57 }
  0xbb   : > { %v1550_v2 = vpop.permute.xlu1 %1549 }
  0xbc   : > { %1900 = vmatmul.mubr.msk.f32.vlgmr.msra.gmra.mrb[14].mxu1 %vm194_vm3, %v1829_v63 }
  0xbd   : > { %v1548_v3 = vpop.permute.xlu0 %1547  ;;  %1826 = vmatmul.mubr.msk.f32.vlgmr.msra.gmra.mrb[0].mxu0 %vm194_vm3, %v1823_v58  ;;  %1904 = vmatprep.mubr.msk.f32.mxu1 %vm1957_vm0, %v1954_v0 }
  0xbe   : > { %1831 = vmatpush1.msk.msra.mxu0 %vm198_vm2, %v1381_v1  ;;  %v1555_v4 = vsel %vm1553_vm10, %v1548_v3, %v1550_v2  ;;  %1457 = vmatprep.mubr.f32.mxu0 %v1954_v0 }
  0xbf   : > { %1836 = vmatprep.subr.msk.mxu0 %vm198_vm2, %v1555_v4  ;;  %v1546_v5 = vpop.permute.xlu1 %1545 }
  0xc0   : > { %v1554_v9 = vsel %vm1553_vm10, %v1546_v5, %v1548_v3 }
  0xc1   : > { %v1552_v6 = vpop.permute.xlu0 %1551 }
  0xc2   : > { %v1556_v8 = vsel %vm1553_vm10, %v1550_v2, %v1552_v6 }
  0xc3   : > { %1903 = vmatpush3.msk.msra.mxu1 %vm198_vm2, %v1556_v8 }
  0xc4   : > { %1905 = vmatmul.mubr.msk.f32.vlgmr.msra.gmra.mrb[16].mxu1 %vm194_vm3, %v1835_v7 }
  0xc5   : > { %1832 = vmatmul.mubr.msk.f32.vlgmr.msra.gmra.mrb[0].mxu0 %vm194_vm3, %v1829_v63 }
  0xc6   : > { %1837 = vmatpush1.msk.msra.mxu0 %vm198_vm2, %v1554_v9  ;;  %1630 = vmatprep.mubr.f32.mxu0 %v1954_v0 }
  0xcd   : > { %1838 = vmatmul.mubr.msk.f32.vlgmr.msra.gmra.mrb[0].mxu0 %vm194_vm3, %v1835_v7 }
  0xd2   : > { %v1714_v33 = vpop.permute.xlu0 %1713 }
 0x169   : > { %v342_v10 = vpop.f32.mrb[0].mxu1 }
 0x16a   : > { %v1866_v11 = vpop.f32.mrb[1].mxu1 }
 0x16d   : > { %v495_v12 = vpop.f32.mrb[2].mxu1 }
 0x16e   : > { %v496_v13 = vadd.f32 %v495_v12, %v342_v10  ;;  %v1871_v14 = vpop.f32.mrb[3].mxu1 }
 0x173   : > { %v665_v15 = vpop.f32.mrb[4].mxu1 }
 0x174   : > { %v671_v16 = vadd.f32 %v665_v15, %v496_v13  ;;  %v1876_v17 = vpop.f32.mrb[5].mxu1 }
 0x17a   : > { %v838_v18 = vpop.f32.mrb[6].mxu1 }
 0x17b   : > { %v844_v19 = vadd.f32 %v838_v18, %v671_v16  ;;  %v1881_v20 = vpop.f32.mrb[7].mxu1 }
 0x17f   : > { %v1011_v21 = vpop.f32.mrb[8].mxu1 }
 0x180   : > { %v1017_v22 = vadd.f32 %v1011_v21, %v844_v19  ;;  %v1886_v23 = vpop.f32.mrb[9].mxu1 }
 0x187   : > { %v1184_v24 = vpop.f32.mrb[10].mxu1 }
 0x188   : > { %v1190_v25 = vadd.f32 %v1184_v24, %v1017_v22  ;;  %v1891_v0 = vpop.f32.mrb[11].mxu1 }
 0x18b   : > { %v1357_v26 = vpop.f32.mrb[12].mxu1 }
 0x18c   : > { %v1363_v27 = vadd.f32 %v1357_v26, %v1190_v25  ;;  %v1896_v28 = vpop.f32.mrb[13].mxu1 }
 0x18f   : > { %v1530_v29 = vpop.f32.mrb[14].mxu1 }
 0x190   : > { %v1536_v30 = vadd.f32 %v1530_v29, %v1363_v27  ;;  %v1901_v31 = vpop.f32.mrb[15].mxu1 }
 0x197   : > { %v1703_v32 = vpop.f32.mrb[16].mxu1 }
 0x198   : > { %v1709_v34 = vadd.f32 %v1703_v32, %v1536_v30  ;;  %v1906_v35 = vpop.f32.mrb[17].mxu1 }
 0x19a   : > { %v1718_v36 = vadd.f32 %v1714_v33, %v1709_v34 }
 0x19c   : > { %v1721_v37 = vmax.f32 %v1718_v36, 0.0 }
 0x19e   : > { %1724 = vst [vmem:[%s170_s24 + $0x10] sm:$0xff] %v1721_v37 }
 0x1a0   : > { %v1632_v38 = vpop.f32.mrb[0].mxu0 }
 0x1a1   : > { %v1716_v39 = vadd.f32 %v1714_v33, %v1632_v38  ;;  %v1634_v40 = vpop.f32.mrb[1].mxu0 }
 0x1a2   : > { %v1717_v41 = vadd.f32 %v1714_v33, %v1634_v40 }
 0x1a3   : > { %v1719_v42 = vmax.f32 %v1716_v39, 0.0 }
 0x1a4   : > { %v1720_v43 = vmax.f32 %v1717_v41, 0.0 }
 0x1a5   : > { %1722 = vst [vmem:[%s170_s24] sm:$0xff] %v1719_v42 }
 0x1a6   : > { %1723 = vst [vmem:[%s170_s24 + $0x8] sm:$0xff] %v1720_v43 }
 0x1a7 PF: > { %s13_s12 = sadd.s32 1, %s1952_s12  }
 0x1a8   : > { %p10_p4 = scmp.ge.s32.totalorder %s13_s12, 4  }
 0x1aa   :  { %12 = sbr.rel (!%p10_p4) target bundleno = 1 (0x1), region = 70 }

</bundles_post_ra>
